<compile_context>
chip_gen: v7x
topology: tpu7x:2x2x1
jax: 0.10.0
libtpu: 0.0.40
codegen_flags: <defaults>
</compile_context>

<pallas_src>
import jax
import jax.numpy as jnp
from jax.experimental import pallas as pl
from jax.experimental.pallas import tpu as pltpu

LANE = 128
SUBLANE = 8


def _rup(n, m):
    return ((n + m - 1) // m) * m


def make_user_vae_kernel(n_q, n_p, q_out_pad, p_out_pad, lp):
    """Build a kernel for a fixed (static) layer configuration."""

    def kernel(*refs):
        # refs = [x, q_w..., p_w..., bias_pack, logits_out, enc_out]
        x_ref = refs[0]
        qw_refs = refs[1:1 + n_q]
        pw_refs = refs[1 + n_q:1 + n_q + n_p]
        b_ref = refs[1 + n_q + n_p]
        logits_ref = refs[2 + n_q + n_p]
        enc_ref = refs[3 + n_q + n_p]

        # ---- encoder ----
        h = x_ref[...].astype(jnp.float32)
        for i in range(n_q):
            h = jnp.dot(h, qw_refs[i][...],
                        preferred_element_type=jnp.float32)
            h = h + b_ref[i:i + 1, :q_out_pad[i]]
            if i != n_q - 1:
                h = jnp.tanh(h)

        # ---- reparameterize (eval mode): z = mu = first lane-aligned half ----
        d = h[:, :lp]

        # ---- decoder ----
        for j in range(n_p):
            d = jnp.dot(d, pw_refs[j][...],
                        preferred_element_type=jnp.float32)
            d = d + b_ref[n_q + j:n_q + j + 1, :p_out_pad[j]]
            if j != n_p - 1:
                d = jnp.tanh(d)

        logits_ref[...] = d.astype(logits_ref.dtype)     # lane-dense store
        enc_ref[...] = h.astype(enc_ref.dtype)           # [mu|pad|logvar|pad]

    return kernel


def pack_params(q_w, q_b, p_w, p_b, latent):
    """Zero-pad every layer's output width to a multiple of 128 lanes.

    The encoder's final layer is laid out as [mu | pad | log_var | pad] so
    z = mu is a vreg-aligned slice and the decoder's first contraction dim is
    a 128-multiple.  Zero columns / zero biases keep the result exact.
    """
    lp = _rup(latent, LANE)
    n_q = len(q_w)
    q_wp, p_wp, biases = [], [], []

    d_in_pad = int(q_w[0].shape[0])      # first layer input stays == x width
    for i, (w, b) in enumerate(zip(q_w, q_b)):
        d_in, d_out = int(w.shape[0]), int(w.shape[1])
        if i == n_q - 1:
            out_pad = 2 * lp
            wp = jnp.zeros((d_in_pad, out_pad), jnp.float32)
            wp = wp.at[:d_in, :latent].set(w[:, :latent])           # mu half
            wp = wp.at[:d_in, lp:lp + latent].set(w[:, latent:])    # logvar half
            bp = jnp.zeros((out_pad,), jnp.float32)
            bp = bp.at[:latent].set(b[:latent])
            bp = bp.at[lp:lp + latent].set(b[latent:])
        else:
            out_pad = _rup(d_out, LANE)
            wp = jnp.zeros((d_in_pad, out_pad), jnp.float32)
            wp = wp.at[:d_in, :d_out].set(w)
            bp = jnp.zeros((out_pad,), jnp.float32).at[:d_out].set(b)
        q_wp.append(wp)
        biases.append(bp)
        d_in_pad = out_pad

    d_in_pad = lp                        # decoder consumes z = h[:, :lp]
    for (w, b) in zip(p_w, p_b):
        d_in, d_out = int(w.shape[0]), int(w.shape[1])
        out_pad = _rup(d_out, LANE)
        wp = jnp.zeros((d_in_pad, out_pad), jnp.float32)
        wp = wp.at[:d_in, :d_out].set(w)
        bp = jnp.zeros((out_pad,), jnp.float32).at[:d_out].set(b)
        p_wp.append(wp)
        biases.append(bp)
        d_in_pad = out_pad

    max_out = max(int(b.shape[0]) for b in biases)
    b_packed = jnp.stack(
        [jnp.pad(b, (0, max_out - int(b.shape[0]))) for b in biases], axis=0)
    return q_wp, p_wp, b_packed, lp


def user_vae_forward(x, params, *, block_b=256):
    """x: (B, input_dim) float32. Returns (logits, mu, log_var)."""
    B, input_dim = x.shape
    q_wp, p_wp = params["q_wp"], params["p_wp"]
    b_packed = params["b_packed"]
    latent, lp = params["latent"], params["lp"]
    n_q, n_p = len(q_wp), len(p_wp)
    q_out_pad = tuple(int(w.shape[1]) for w in q_wp)
    p_out_pad = tuple(int(w.shape[1]) for w in p_wp)
    enc_w, dec_w = q_out_pad[-1], p_out_pad[-1]

    # Batch tile: multiple of 8 sublanes (f32), capped by B.
    tb = min(B, block_b)
    if tb >= SUBLANE:
        tb = (tb // SUBLANE) * SUBLANE
    grid = (pl.cdiv(B, tb),)

    kernel = make_user_vae_kernel(n_q, n_p, q_out_pad, p_out_pad, lp)

    # Advisory cost estimate so XLA schedules this tiny call tightly.
    flops = 2 * B * sum(int(w.shape[0]) * int(w.shape[1]) for w in q_wp + p_wp)
    transcendentals = B * (sum(q_out_pad[:-1]) + sum(p_out_pad[:-1]))
    bytes_accessed = 4 * (int(x.size)
                          + sum(int(w.size) for w in q_wp + p_wp)
                          + int(b_packed.size)
                          + B * dec_w + B * enc_w)
    cost = pl.CostEstimate(flops=int(flops),
                           transcendentals=int(transcendentals),
                           bytes_accessed=int(bytes_accessed))

    # Weights / biases: full-array blocks with constant index_map -> DMA'd
    # once, VMEM-resident across all batch-grid steps.
    weight_specs = [pl.BlockSpec(tuple(int(s) for s in w.shape),
                                 lambda i: (0, 0))
                    for w in list(q_wp) + list(p_wp)]
    bias_spec = pl.BlockSpec(tuple(int(s) for s in b_packed.shape),
                             lambda i: (0, 0))

    logits_pad, enc = pl.pallas_call(
        kernel,
        out_shape=(jax.ShapeDtypeStruct((B, dec_w), jnp.float32),
                   jax.ShapeDtypeStruct((B, enc_w), jnp.float32)),
        grid=grid,
        in_specs=[pl.BlockSpec((tb, input_dim), lambda i: (i, 0))]
                 + weight_specs + [bias_spec],
        out_specs=(pl.BlockSpec((tb, dec_w), lambda i: (i, 0)),
                   pl.BlockSpec((tb, enc_w), lambda i: (i, 0))),
        compiler_params=pltpu.CompilerParams(
            dimension_semantics=("parallel",),
            vmem_limit_bytes=64 * 1024 * 1024),
        cost_estimate=cost,
    )(x, *q_wp, *p_wp, b_packed)

    logits = logits_pad[:, :input_dim] if dec_w != input_dim else logits_pad
    mu = enc[:, :latent]
    log_var = enc[:, lp:lp + latent]
    return logits, mu, log_var


def init_params(key, input_dim, hidden_dims):
    """Deterministic synthetic init mirroring nn.Linear. Weights as (in, out)."""
    q_dims = [input_dim] + list(hidden_dims)
    p_dims = q_dims[::-1]
    latent = q_dims[-1]
    temp_q_dims = q_dims[:-1] + [q_dims[-1] * 2]
    q_pairs = list(zip(temp_q_dims[:-1], temp_q_dims[1:]))
    p_pairs = list(zip(p_dims[:-1], p_dims[1:]))

    keys = jax.random.split(key, len(q_pairs) + len(p_pairs))

    def linear(k, d_in, d_out):
        kw, kb = jax.random.split(k)
        bound = 1.0 / (d_in ** 0.5)
        w = jax.random.uniform(kw, (d_in, d_out), jnp.float32, -bound, bound)
        b = jax.random.uniform(kb, (d_out,), jnp.float32, -bound, bound)
        return w, b

    q_w, q_b, p_w, p_b = [], [], [], []
    for idx, (d_in, d_out) in enumerate(q_pairs):
        w, b = linear(keys[idx], d_in, d_out)
        q_w.append(w)
        q_b.append(b)
    for jdx, (d_in, d_out) in enumerate(p_pairs):
        w, b = linear(keys[len(q_pairs) + jdx], d_in, d_out)
        p_w.append(w)
        p_b.append(b)

    q_wp, p_wp, b_packed, lp = pack_params(q_w, q_b, p_w, p_b, latent)
    return {"q_w": q_w, "q_b": q_b, "p_w": p_w, "p_b": p_b,
            "q_wp": q_wp, "p_wp": p_wp, "b_packed": b_packed,
            "latent": latent, "lp": lp}


def user_vae_ref(x, params):
    """Pure-JAX reference for verification (eval-mode forward)."""
    q_w, q_b = params["q_w"], params["q_b"]
    p_w, p_b = params["p_w"], params["p_b"]
    h = x
    for i, (w, b) in enumerate(zip(q_w, q_b)):
        h = h @ w + b
        if i != len(q_w) - 1:
            h = jnp.tanh(h)
    latent = h.shape[1] // 2
    mu, log_var = h[:, :latent], h[:, latent:]
    d = mu  # z = mu in eval mode
    for j, (w, b) in enumerate(zip(p_w, p_b)):
        d = d @ w + b
        if j != len(p_w) - 1:
            d = jnp.tanh(d)
    return d, mu, log_var


if __name__ == "__main__":
    # Small shapes implied by the module: input_dim=64, hidden_dims=[32, 16].
    # B=16 with block_b=8 exercises the batch grid (grid=(2,)) with weights
    # resident in VMEM across both steps.
    B, input_dim = 16, 64
    hidden_dims = [32, 16]

    key = jax.random.PRNGKey(0)
    kx, kp = jax.random.split(key)
    x = jax.random.normal(kx, (B, input_dim), jnp.float32)
    params = init_params(kp, input_dim, hidden_dims)

    logits, mu, log_var = user_vae_forward(x, params, block_b=8)
    jax.block_until_ready((logits, mu, log_var))

    ref_logits, ref_mu, ref_logvar = user_vae_ref(x, params)
    assert jnp.allclose(logits, ref_logits, atol=1e-5, rtol=1e-5)
    assert jnp.allclose(mu, ref_mu, atol=1e-5, rtol=1e-5)
    assert jnp.allclose(log_var, ref_logvar, atol=1e-5, rtol=1e-5)

    print("KERNEL_OK")
</pallas_src>

<mosaic_0001>
module attributes {stable_mosaic.version = 11 : i64} {
  func.func @kernel(%arg0: i32, %arg1: memref<8x64xf32, #tpu.memory_space<vmem>>, %arg2: memref<64x128xf32, #tpu.memory_space<vmem>>, %arg3: memref<128x256xf32, #tpu.memory_space<vmem>>, %arg4: memref<128x128xf32, #tpu.memory_space<vmem>>, %arg5: memref<128x128xf32, #tpu.memory_space<vmem>>, %arg6: memref<4x256xf32, #tpu.memory_space<vmem>>, %arg7: memref<8x128xf32, #tpu.memory_space<vmem>>, %arg8: memref<8x256xf32, #tpu.memory_space<vmem>>) attributes {dimension_semantics = [#tpu.dimension_semantics<parallel>], iteration_bounds = array<i64: 2>, scalar_prefetch = 0 : i64, scratch_operands = 0 : i64, tpu.core_type = #tpu.core_type<tc>, window_params = [{transform_indices = @transform_0, window_bounds = array<i64: 8, 64>}, {pipeline_mode = #tpu.pipeline_mode<synchronous>, transform_indices = @transform_1, window_bounds = array<i64: 64, 128>}, {pipeline_mode = #tpu.pipeline_mode<synchronous>, transform_indices = @transform_2, window_bounds = array<i64: 128, 256>}, {pipeline_mode = #tpu.pipeline_mode<synchronous>, transform_indices = @transform_3, window_bounds = array<i64: 128, 128>}, {pipeline_mode = #tpu.pipeline_mode<synchronous>, transform_indices = @transform_4, window_bounds = array<i64: 128, 128>}, {pipeline_mode = #tpu.pipeline_mode<synchronous>, transform_indices = @transform_5, window_bounds = array<i64: 4, 256>}, {transform_indices = @transform_6, window_bounds = array<i64: 8, 128>}, {transform_indices = @transform_7, window_bounds = array<i64: 8, 256>}]} {
    %c0 = arith.constant 0 : index
    %c0_0 = arith.constant 0 : index
    %0 = vector.load %arg1[%c0, %c0_0] : memref<8x64xf32, #tpu.memory_space<vmem>>, vector<8x64xf32>
    %c0_1 = arith.constant 0 : index
    %c0_2 = arith.constant 0 : index
    %1 = vector.load %arg2[%c0_1, %c0_2] : memref<64x128xf32, #tpu.memory_space<vmem>>, vector<64x128xf32>
    %cst = arith.constant dense<0.000000e+00> : vector<8x128xf32>
    %2 = tpu.matmul %0, %1, %cst {dimension_numbers = #tpu.dot_dimension_numbers<[1], [0], [0], [1], [0, 0, 1, 1], [], []>} : vector<8x64xf32>, vector<64x128xf32>, vector<8x128xf32> -> vector<8x128xf32>
    %c0_3 = arith.constant 0 : index
    %c0_4 = arith.constant 0 : index
    %3 = vector.load %arg6[%c0_3, %c0_4] : memref<4x256xf32, #tpu.memory_space<vmem>>, vector<1x128xf32>
    %4 = vector.broadcast %3 : vector<1x128xf32> to vector<8x128xf32>
    %5 = arith.addf %2, %4 : vector<8x128xf32>
    %6 = math.tanh %5 : vector<8x128xf32>
    %c0_5 = arith.constant 0 : index
    %c0_6 = arith.constant 0 : index
    %7 = vector.load %arg3[%c0_5, %c0_6] : memref<128x256xf32, #tpu.memory_space<vmem>>, vector<128x256xf32>
    %cst_7 = arith.constant dense<0.000000e+00> : vector<8x256xf32>
    %8 = tpu.matmul %6, %7, %cst_7 {dimension_numbers = #tpu.dot_dimension_numbers<[1], [0], [0], [1], [0, 0, 1, 1], [], []>} : vector<8x128xf32>, vector<128x256xf32>, vector<8x256xf32> -> vector<8x256xf32>
    %c1 = arith.constant 1 : index
    %c0_8 = arith.constant 0 : index
    %9 = vector.load %arg6[%c1, %c0_8] : memref<4x256xf32, #tpu.memory_space<vmem>>, vector<1x256xf32>
    %10 = vector.broadcast %9 : vector<1x256xf32> to vector<8x256xf32>
    %11 = arith.addf %8, %10 : vector<8x256xf32>
    %12 = vector.extract_strided_slice %11 {offsets = [0, 0], sizes = [8, 128], strides = [1, 1]} : vector<8x256xf32> to vector<8x128xf32>
    %c0_9 = arith.constant 0 : index
    %c0_10 = arith.constant 0 : index
    %13 = vector.load %arg4[%c0_9, %c0_10] : memref<128x128xf32, #tpu.memory_space<vmem>>, vector<128x128xf32>
    %cst_11 = arith.constant dense<0.000000e+00> : vector<8x128xf32>
    %14 = tpu.matmul %12, %13, %cst_11 {dimension_numbers = #tpu.dot_dimension_numbers<[1], [0], [0], [1], [0, 0, 1, 1], [], []>} : vector<8x128xf32>, vector<128x128xf32>, vector<8x128xf32> -> vector<8x128xf32>
    %c2 = arith.constant 2 : index
    %c0_12 = arith.constant 0 : index
    %15 = vector.load %arg6[%c2, %c0_12] : memref<4x256xf32, #tpu.memory_space<vmem>>, vector<1x128xf32>
    %16 = vector.broadcast %15 : vector<1x128xf32> to vector<8x128xf32>
    %17 = arith.addf %14, %16 : vector<8x128xf32>
    %18 = math.tanh %17 : vector<8x128xf32>
    %c0_13 = arith.constant 0 : index
    %c0_14 = arith.constant 0 : index
    %19 = vector.load %arg5[%c0_13, %c0_14] : memref<128x128xf32, #tpu.memory_space<vmem>>, vector<128x128xf32>
    %cst_15 = arith.constant dense<0.000000e+00> : vector<8x128xf32>
    %20 = tpu.matmul %18, %19, %cst_15 {dimension_numbers = #tpu.dot_dimension_numbers<[1], [0], [0], [1], [0, 0, 1, 1], [], []>} : vector<8x128xf32>, vector<128x128xf32>, vector<8x128xf32> -> vector<8x128xf32>
    %c3 = arith.constant 3 : index
    %c0_16 = arith.constant 0 : index
    %21 = vector.load %arg6[%c3, %c0_16] : memref<4x256xf32, #tpu.memory_space<vmem>>, vector<1x128xf32>
    %22 = vector.broadcast %21 : vector<1x128xf32> to vector<8x128xf32>
    %23 = arith.addf %20, %22 : vector<8x128xf32>
    %c0_17 = arith.constant 0 : index
    %c0_18 = arith.constant 0 : index
    %24 = vector.load %arg7[%c0_17, %c0_18] : memref<8x128xf32, #tpu.memory_space<vmem>>, vector<8x128xf32>
    tpu.vector_store %arg7[%c0_17, %c0_18], %23 {strides = array<i32>} : memref<8x128xf32, #tpu.memory_space<vmem>>, vector<8x128xf32>,
    %c0_19 = arith.constant 0 : index
    %c0_20 = arith.constant 0 : index
    %25 = vector.load %arg8[%c0_19, %c0_20] : memref<8x256xf32, #tpu.memory_space<vmem>>, vector<8x256xf32>
    tpu.vector_store %arg8[%c0_19, %c0_20], %11 {strides = array<i32>} : memref<8x256xf32, #tpu.memory_space<vmem>>, vector<8x256xf32>,
    return
  }
  func.func @transform_0(%arg0: i32) -> (i32, i32) {
    %c0_i32 = arith.constant 0 : i32
    %c0_i32_0 = arith.constant 0 : i32
    return %arg0, %c0_i32 : i32, i32
  }
  func.func @transform_1(%arg0: i32) -> (i32, i32) {
    %c0_i32 = arith.constant 0 : i32
    %c0_i32_0 = arith.constant 0 : i32
    %c0_i32_1 = arith.constant 0 : i32
    return %c0_i32, %c0_i32_0 : i32, i32
  }
  func.func @transform_2(%arg0: i32) -> (i32, i32) {
    %c0_i32 = arith.constant 0 : i32
    %c0_i32_0 = arith.constant 0 : i32
    %c0_i32_1 = arith.constant 0 : i32
    return %c0_i32, %c0_i32_0 : i32, i32
  }
  func.func @transform_3(%arg0: i32) -> (i32, i32) {
    %c0_i32 = arith.constant 0 : i32
    %c0_i32_0 = arith.constant 0 : i32
    %c0_i32_1 = arith.constant 0 : i32
    return %c0_i32, %c0_i32_0 : i32, i32
  }
  func.func @transform_4(%arg0: i32) -> (i32, i32) {
    %c0_i32 = arith.constant 0 : i32
    %c0_i32_0 = arith.constant 0 : i32
    %c0_i32_1 = arith.constant 0 : i32
    return %c0_i32, %c0_i32_0 : i32, i32
  }
  func.func @transform_5(%arg0: i32) -> (i32, i32) {
    %c0_i32 = arith.constant 0 : i32
    %c0_i32_0 = arith.constant 0 : i32
    %c0_i32_1 = arith.constant 0 : i32
    return %c0_i32, %c0_i32_0 : i32, i32
  }
  func.func @transform_6(%arg0: i32) -> (i32, i32) {
    %c0_i32 = arith.constant 0 : i32
    %c0_i32_0 = arith.constant 0 : i32
    return %arg0, %c0_i32 : i32, i32
  }
  func.func @transform_7(%arg0: i32) -> (i32, i32) {
    %c0_i32 = arith.constant 0 : i32
    %c0_i32_0 = arith.constant 0 : i32
    return %arg0, %c0_i32 : i32, i32
  }
}

</mosaic_0001>

<bundles_post_ra>
// kernel: tpu_custom_call.1
= control target key start
LH: loop header
LB: loop body
LE: loop exit
PB: predicated region body
PF: predicated region fallthrough
CT: control target
= control target key end

     0   :  { %s2019_s0 = inlined_call_operand.hbm [shape: f32[16,64], index: 0, kind: input, shape index: {}]   ;;  %s2020_s1 = inlined_call_operand.hbm [shape: f32[64,128], index: 1, kind: input, shape index: {}]   ;;  %s2021_s2 = inlined_call_operand.hbm [shape: f32[128,256], index: 2, kind: input, shape index: {}]   ;;  %s2022_s3 = inlined_call_operand.hbm [shape: f32[128,128], index: 3, kind: input, shape index: {}]   ;;  %s2023_s4 = inlined_call_operand.hbm [shape: f32[128,128], index: 4, kind: input, shape index: {}]   ;;  %s2024_s5 = inlined_call_operand.hbm [shape: f32[4,256], index: 5, kind: input, shape index: {}]   ;;  %s2025_s6 = inlined_call_operand.hbm [shape: f32[16,128], index: 6, kind: output, shape index: {0}]   ;;  %s2026_s7 = inlined_call_operand.hbm [shape: f32[16,256], index: 7, kind: output, shape index: {1}]  }
   0x1   :  { %2032 = sst [smem:[#allocation22_spill]] %s2020_s1 }
   0x2   :  { %13 = vsyncpa [#allocation3], 0 }
   0x3   :  { %15 = vsyncpa [#allocation3 + $0x1], 0 }
   0x4   :  { %16 = vsyncpa [#allocation6], 0 }
   0x5   :  { %17 = vsyncpa [#allocation9], 0 }
   0x6   :  { %18 = vsyncpa [#allocation12], 0 }
   0x7   :  { %19 = vsyncpa [#allocation4], 0 }
   0x8   :  { %21 = vsyncpa [#allocation4 + $0x1], 0 }
   0x9   :  { %22 = vsyncpa [#allocation15], 0 }
   0xa   :  { %24 = vsyncpa [#allocation15 + $0x1], 0  ;;  %s1655_s24 = smov 0   ;;  %s1657_s25 = smov 0  }
   0xb   :  { %s1659_s26 = smov 0   ;;  %s1661_s27 = smov 0  }
   0xc LB: > { %s1600_s28 = smov [#allocation5]   ;;  %s1676_s30 = sadd.s32 4294967295, %s1598_s27   ;;  %s1598_s27 = sphi %s1661_s27, %s2057_s27   ;;  %s1594_s26 = sphi %s1659_s26, %s2056_s26   ;;  %s1590_s25 = sphi %s1657_s25, %s2055_s25   ;;  %s1586_s24 = sphi %s1655_s24, %s2054_s24  }
   0xd   : > { %s230_s29 = sshll.u32 %s1600_s28, 4  ;;  %p951_p0 = scmp.ge.s32.totalorder %s1598_s27, 1  ;;  %s1681_s29 = int_to_ptr.vmem [resolvable:$true] %s230_s29 }
   0xe   : > { %p2029_p1 = scmp.eq.s32.totalorder %s1676_s30, 0  ;;  %p218_p2 = scmp.lt.s32.totalorder %s1598_s27, 3 }
   0xf   : > { %s1601_s9 = smov [#allocation8]   ;;  %s1602_s12 = smov [#allocation7]  }
  0x10   : > { %p1683_p3 = pnand %p951_p0, %p218_p2  ;;  %s256_s10 = sshll.u32 %s1601_s9, 4  ;;  %s1696_s10 = int_to_ptr.vmem [resolvable:$true] %s256_s10 }
  0x11   : > { %s243_s13 = sshll.u32 %s1602_s12, 4  ;;  %s2035_s1 = sld [smem:[#allocation22_spill]]  ;;  %s1698_s13 = int_to_ptr.vmem [resolvable:$true] %s243_s13 }
  0x12   : > { %s2033_s8 = scalar_select %p1683_p3, 1, 0 }
  0x13   : > { %p1231_p5 = pneg %p1683_p3 }
  0x15   : > { %p1692_p6 = pnand %p1231_p5, %p2029_p1 }
  0x17   : > { %s1318_s16 = scalar_lea.hbm %s2035_s1, 1024  ;;  %p1708_p8 = pneg %p1692_p6 }
  0x18   : > { %p1319_p7 = scmp.ne.s32.totalorder %s2035_s1, %s1318_s16  ;;  %p1325_p11 = scmp.lt.u32.totalorder %s1318_s16, %s2035_s1 }
  0x1a   : > { %p1321_p9 = pnand %p1708_p8, %p1319_p7 }
  0x1c   : > { %p1322_p10 = pneg %p1321_p9 }
  0x1e   : > { %p1327_p12 = pnand %p1325_p11, %p1322_p10 }
  0x20   : > { %1330 = shalt.err (!%p1327_p12)
}
  0x21   : > { %s1331_s22 = scalar_lea.vmem %s1681_s29, 1024  ;;  %p1339_p5 = scmp.lt.s32.totalorder %s1681_s29, %s1681_s29 }
  0x22   : > { %p1332_p13 = scmp.ne.s32.totalorder %s1681_s29, %s1331_s22  ;;  %p1340_p4 = scmp.lt.s32.totalorder %s1331_s22, %s1331_s22 }
  0x24   : > { %p1334_p0 = pnand %p1332_p13, %p1708_p8  ;;  %p1341_p7 = por %p1340_p4, %p1339_p5 }
  0x26   : > { %p1335_p2 = pneg %p1334_p0 }
  0x28   : > { %p1342_p9 = pnand %p1341_p7, %p1335_p2 }
  0x2a   : > { %1345 = shalt.err (!%p1342_p9)
}
  0x2b   : > { %s2027_s23 = smov 128   ;;  %s2028_s28 = smov 8  }
  0x2c   : > { %1234 = dma.hbm_to_vmem [thread:$0]  (!%p1692_p6), %s2035_s1, 1024, %s1681_s29, [#allocation6], %s2027_s23, %s2027_s23, %s2028_s28  }
  0x2d   : > { %s1346_s16 = scalar_lea.hbm %s2022_s3, 2048 }
  0x2e   : > { %p1347_p4 = scmp.ne.s32.totalorder %s2022_s3, %s1346_s16  ;;  %p1353_p12 = scmp.lt.u32.totalorder %s1346_s16, %s2022_s3 }
  0x30   : > { %p1349_p10 = pnand %p1347_p4, %p1708_p8 }
  0x32   : > { %p1350_p11 = pneg %p1349_p10 }
  0x34   : > { %p1355_p13 = pnand %p1353_p12, %p1350_p11 }
  0x36   : > { %1358 = shalt.err (!%p1355_p13)
}
  0x37   : > { %s1359_s29 = scalar_lea.vmem %s1696_s10, 2048  ;;  %p1367_p7 = scmp.lt.s32.totalorder %s1696_s10, %s1696_s10 }
  0x38   : > { %p1360_p0 = scmp.ne.s32.totalorder %s1696_s10, %s1359_s29  ;;  %p1368_p9 = scmp.lt.s32.totalorder %s1359_s29, %s1359_s29 }
  0x3a   : > { %p1362_p2 = pnand %p1360_p0, %p1708_p8  ;;  %p1369_p4 = por %p1368_p9, %p1367_p7 }
  0x3c   : > { %p1363_p5 = pneg %p1362_p2 }
  0x3e   : > { %p1370_p10 = pnand %p1369_p4, %p1363_p5 }
  0x40   : > { %1373 = shalt.err (!%p1370_p10)
}
  0x41   : > { %1240 = dma.hbm_to_vmem [thread:$0]  (!%p1692_p6), %s2022_s3, 2048, %s1696_s10, [#allocation9], %s2027_s23, %s2027_s23, %s2028_s28  }
  0x42   : > { %s1374_s15 = scalar_lea.hbm %s2021_s2, 4096 }
  0x43   : > { %p1375_p11 = scmp.ne.s32.totalorder %s2021_s2, %s1374_s15  ;;  %p1381_p0 = scmp.lt.u32.totalorder %s1374_s15, %s2021_s2 }
  0x45   : > { %p1377_p12 = pnand %p1375_p11, %p1708_p8 }
  0x47   : > { %p1378_p13 = pneg %p1377_p12 }
  0x49   : > { %p1383_p2 = pnand %p1381_p0, %p1378_p13 }
  0x4b   : > { %1386 = shalt.err (!%p1383_p2)
}
  0x4c   : > { %s1387_s10 = scalar_lea.vmem %s1698_s13, 4096  ;;  %p1395_p4 = scmp.lt.s32.totalorder %s1698_s13, %s1698_s13 }
  0x4d   : > { %p1388_p5 = scmp.ne.s32.totalorder %s1698_s13, %s1387_s10  ;;  %p1396_p10 = scmp.lt.s32.totalorder %s1387_s10, %s1387_s10 }
  0x4f   : > { %p1390_p7 = pnand %p1388_p5, %p1708_p8  ;;  %p1397_p11 = por %p1396_p10, %p1395_p4 }
  0x51   : > { %p1391_p9 = pneg %p1390_p7 }
  0x53   : > { %p1398_p12 = pnand %p1397_p11, %p1391_p9 }
  0x55   : > { %1401 = shalt.err (!%p1398_p12)
}
  0x56   : > { %s1605_s21 = smov 256   ;;  %s1606_s29 = smov 16  }
  0x57   : > { %1237 = dma.hbm_to_vmem [thread:$0]  (!%p1692_p6), %s2021_s2, 4096, %s1698_s13, [#allocation6], %s1605_s21, %s1605_s21, %s1606_s29  }
  0x58   : > { %s1607_s12 = smov [#allocation10]   ;;  %s1608_s15 = smov [#allocation11]  }
  0x59   : > { %s269_s14 = sshll.u32 %s1607_s12, 4  ;;  %s283_s16 = sshll.u32 %s1608_s15, 4  ;;  %s270_s14 = int_to_ptr.vmem [resolvable:$true] %s269_s14  ;;  %s284_s16 = int_to_ptr.vmem [resolvable:$true] %s283_s16 }
  0x5a   : > { %s1402_s20 = scalar_lea.hbm %s2023_s4, 2048 }
  0x5b   : > { %p1403_p13 = scmp.ne.s32.totalorder %s2023_s4, %s1402_s20  ;;  %p1409_p5 = scmp.lt.u32.totalorder %s1402_s20, %s2023_s4 }
  0x5d   : > { %p1405_p0 = pnand %p1403_p13, %p1708_p8 }
  0x5f   : > { %p1406_p2 = pneg %p1405_p0 }
  0x61   : > { %p1411_p7 = pnand %p1409_p5, %p1406_p2 }
  0x63   : > { %1414 = shalt.err (!%p1411_p7)
}
  0x64   : > { %s1415_s13 = scalar_lea.vmem %s270_s14, 2048  ;;  %p1423_p11 = scmp.lt.s32.totalorder %s270_s14, %s270_s14 }
  0x65   : > { %p1416_p9 = scmp.ne.s32.totalorder %s270_s14, %s1415_s13  ;;  %p1424_p12 = scmp.lt.s32.totalorder %s1415_s13, %s1415_s13 }
  0x67   : > { %p1418_p4 = pnand %p1416_p9, %p1708_p8  ;;  %p1425_p1 = por %p1424_p12, %p1423_p11 }
  0x69   : > { %p1419_p10 = pneg %p1418_p4 }
  0x6b   : > { %p1426_p3 = pnand %p1425_p1, %p1419_p10 }
  0x6d   : > { %1429 = shalt.err (!%p1426_p3)
}
  0x6e   : > { %s2037_s23 = smov 8   ;;  %s2038_s21 = smov 128  }
  0x6f   : > { %1243 = dma.hbm_to_vmem [thread:$0]  (!%p1692_p6), %s2023_s4, 2048, %s270_s14, [#allocation9], %s2038_s21, %s2038_s21, %s2037_s23  }
  0x70   : > { %s1430_s9 = scalar_lea.hbm %s2024_s5, 128 }
  0x71   : > { %p1431_p1 = scmp.ne.s32.totalorder %s2024_s5, %s1430_s9  ;;  %p1437_p0 = scmp.lt.u32.totalorder %s1430_s9, %s2024_s5 }
  0x73   : > { %p1433_p3 = pnand %p1431_p1, %p1708_p8 }
  0x75   : > { %p1434_p13 = pneg %p1433_p3 }
  0x77   : > { %p1439_p2 = pnand %p1437_p0, %p1434_p13 }
  0x79   : > { %1442 = shalt.err (!%p1439_p2)
}
  0x7a   : > { %s1443_s20 = scalar_lea.vmem %s284_s16, 128  ;;  %p1451_p4 = scmp.lt.s32.totalorder %s284_s16, %s284_s16 }
  0x7b   : > { %p1444_p5 = scmp.ne.s32.totalorder %s284_s16, %s1443_s20  ;;  %p1452_p10 = scmp.lt.s32.totalorder %s1443_s20, %s1443_s20 }
  0x7d   : > { %p1446_p7 = pnand %p1444_p5, %p1708_p8  ;;  %p1453_p11 = por %p1452_p10, %p1451_p4 }
  0x7f   : > { %p1447_p9 = pneg %p1446_p7 }
  0x81   : > { %p1454_p12 = pnand %p1453_p11, %p1447_p9 }
  0x83   : > { %1457 = shalt.err (!%p1454_p12)
}
  0x84   : > { %1246 = dma.hbm_to_vmem [thread:$0]  (!%p1692_p6), %s2024_s5, 128, %s284_s16, [#allocation12]  }
  0x85   : > { %s950_s19 = sadd.s32 4294967294, %s1598_s27   ;;  %s1822_s11 = sadd.s32 1, %s1598_s27  }
  0x86   : > { %s37_s13 = sadd.s32 1, %s1594_s26  ;;  %s34_s23 = ssub.s32 %s1598_s27, %s1822_s11 }
  0x87   : > { %p44_p8 = scmp.ne.s32.totalorder %s1594_s26, %s1590_s25  ;;  %p35_p1 = scmp.eq.s32.totalorder %s34_s23, 0 }
  0x88   : > { %p45_p3 = scmp.eq.s32.totalorder %s1598_s27, 0  ;;  %p50_p13 = scmp.ne.s32.totalorder %s1590_s25, %s1586_s24 }
  0x89   : > { %p179_p0 = scmp.eq.s32.totalorder %s1676_s30, 1  ;;  %p2039_p5 = scmp.eq.s32.totalorder %s1676_s30, 0 }
  0x8a   : > { %s1834_s21 = scalar_select %p35_p1, %s1594_s26, %s37_s13  }
  0x8b   : > { %p46_p2 = por %p45_p3, %p44_p8  ;;  %p1838_p7 = por %p2039_p5, %p50_p13 }
  0x8c   : > { %p1842_p6 = por %p179_p0, %p44_p8  ;;  %p185_p9 = scmp.eq.s32.totalorder %s950_s19, 1 }
  0x8d   : > { %p1263_p4 = scmp.lt.s32.totalorder %s1598_s27, 2  ;;  %s294_s28 = sand.u32 1, %s1594_s26  }
  0x8e   : > { %s2041_s16 = scalar_select %p1842_p6, 1, 0 }
  0x8f   : > { %p1848_p10 = por %p185_p9, %p50_p13  ;;  %s958_s22 = sshll.u32 %s294_s28, 3 }
  0x90   : > { %s959_s9 = sshll.u32 %s1598_s27, 7  ;;  %s298_s18 = scalar_lea.vmem [#allocation2], %s958_s22 }
  0x91   : > { %s2042_s29 = scalar_select %p1848_p10, 1, 0 }
  0x92   : > { %s1856_s17 = scalar_lea.hbm %s2019_s0, %s959_s9  ;;  %s305_s20 = sshll.u32 %s298_s18, 4  ;;  %s1862_s20 = int_to_ptr.vmem [resolvable:$true] %s305_s20 }
  0x93   : > { %p1858_p11 = pnand %p1263_p4, %p46_p2  ;;  %s295_s10 = scalar_lea.sflag [#allocation3], %s294_s28 }
  0x94   : > { %s1458_s19 = scalar_lea.hbm %s1856_s17, 128  ;;  %s1463_s22 = scalar_lea.hbm %s2019_s0, 256 }
  0x95   : > { %p1459_p12 = scmp.ne.s32.totalorder %s1856_s17, %s1458_s19  ;;  %p1460_p8 = pneg %p1858_p11 }
  0x96   : > { %p1464_p13 = scmp.lt.u32.totalorder %s1856_s17, %s2019_s0  ;;  %p1465_p0 = scmp.lt.u32.totalorder %s1463_s22, %s1458_s19 }
  0x97   : > { %p1461_p1 = pnand %p1460_p8, %p1459_p12  ;;  %p1467_p5 = scmp.lt.u32.totalorder %s1458_s19, %s1856_s17 }
  0x98   : > { %p1466_p2 = por %p1465_p0, %p1464_p13 }
  0x99   : > { %p1462_p3 = pneg %p1461_p1 }
  0x9a   : > { %p1468_p9 = por %p1467_p5, %p1466_p2 }
  0x9c   : > { %p1469_p4 = pnand %p1468_p9, %p1462_p3 }
  0x9e   : > { %1472 = shalt.err (!%p1469_p4)
}
  0x9f   : > { %s1473_s28 = scalar_lea.vmem %s1862_s20, 128  ;;  %s1609_s15 = smov [#allocation2]  }
  0xa0   : > { %p1474_p12 = scmp.ne.s32.totalorder %s1862_s20, %s1473_s28  ;;  %s1478_s18 = sshll.u32 %s1609_s15, 4  ;;  %s1479_s18 = int_to_ptr.vmem [resolvable:$false] %s1478_s18 }
  0xa1   : > { %s1480_s13 = scalar_lea.vmem %s1479_s18, 256  ;;  %p1481_p6 = scmp.lt.s32.totalorder %s1862_s20, %s1479_s18 }
  0xa2   : > { %p1476_p1 = pnand %p1474_p12, %p1460_p8  ;;  %p1482_p13 = scmp.lt.s32.totalorder %s1480_s13, %s1473_s28 }
  0xa4   : > { %p1477_p10 = pneg %p1476_p1  ;;  %p1483_p0 = por %p1482_p13, %p1481_p6 }
  0xa6   : > { %p1484_p2 = pnand %p1483_p0, %p1477_p10 }
  0xa8   : > { %1487 = shalt.err (!%p1484_p2)
}
  0xa9   : > { %1250 = dma.hbm_to_vmem [thread:$0]  (!%p1858_p11), %s1856_s17, 128, %s1862_s20, %s295_s10  }
  0xaa   : > { %p2044_p3 = scmp.ne.s32.totalorder %s2033_s8, 0 }
  0xab   : > { %s1892_s19 = sand.u32 (!%p2044_p3), 1, %s1590_s25  }
  0xac   : > { %314 = sbr.rel (%p2044_p3) target bundleno = 1099 (0x44b), region = 44  ;;  %s961_s23 = sshll.u32 (!%p2044_p3), %s1892_s19, 3 }
  0xad   : > { %s317_s22 = scalar_lea.sflag (!%p2044_p3), [#allocation3], %s1892_s19  ;;  %s1898_s9 = scalar_lea.vmem (!%p2044_p3), [#allocation2], %s961_s23 }
  0xb3   : > { %1561 = dma.done.wait (%p1838_p7), %s317_s22, 128  }
  0xb4   : > { %1563 = vsyncadd (%p1838_p7), %s317_s22, 4294967168  ;;  %p2045_p6 = scmp.eq.s32.totalorder %s1676_s30, 0 }
  0xb6   : > { %1565 = dma.done.wait (%p2045_p6), [#allocation6], 5120   ;;  %p2046_p10 = pmov %p2045_p6 }
  0xb7   : > { %p2047_p11 = pmov %p2045_p6 }
  0xb8   : > { %1567 = vsyncadd (%p2046_p10), [#allocation6], 4294962176 }
  0xb9   : > { %1569 = dma.done.wait (%p2047_p11), [#allocation9], 4096   ;;  %p2048_p8 = pmov %p2045_p6 }
  0xba   : > { %p2049_p5 = pmov %p2045_p6 }
  0xbb   : > { %1571 = vsyncadd (%p2048_p8), [#allocation9], 4294963200 }
  0xbc   : > { %1573 = dma.done.wait (%p2049_p5), [#allocation12], 128   ;;  %p2050_p9 = pmov %p2049_p5 }
  0xbd   : > { %v1610_v0 = vmov 0.0|0.0   ;;  %vm1611_vm0 = vmmov 0   ;;  %v1612_v1 = vmov 0.0   ;;  %v377_v2 = vld [vmem:[#allocation5] sm:$0xff]  ;;  %v378_v3 = vld [vmem:[#allocation5 + $0x8] sm:$0xff]  ;;  %v379_v4 = vld [vmem:[#allocation5 + $0x10] sm:$0xff] }
  0xbe   : > { %1575 = vsyncadd (%p2050_p9), [#allocation12], 4294967168  ;;  %1113 = vmatprep.subr.bf16.mxu0 %v1610_v0  ;;  %1040 = vmatprep.mubr.msk.f32.mxu0 %vm1611_vm0, %v1612_v1  ;;  %v1114_v5 = vpack.c.bf16 %v378_v3, %v377_v2  ;;  %v380_v6 = vld [vmem:[#allocation5 + $0x18] sm:$0xff]  ;;  %v381_v7 = vld [vmem:[#allocation5 + $0x20] sm:$0xff]  ;;  %vm390_vm1 = vcmask 523264   ;;  %s968_s8 = sshll.u32 %s1892_s19, 4 }
  0xbf   : > { %574 = vmatprep.mubr.f32.mxu1 %v1612_v1  ;;  %v382_v8 = vld [vmem:[#allocation5 + $0x28] sm:$0xff]  ;;  %v1117_v9 = vpack.c.bf16 %v380_v6, %v379_v4  ;;  %v468_v11 = vld [vmem:[#allocation7 + $0x18] sm:$0xff]  ;;  %v465_v12 = vld [vmem:[#allocation7] sm:$0xff]  ;;  %s375_s1 = scalar_lea.vmem [#allocation14], %s968_s8  ;;  %s980_s17 = sshll.u32 %s1676_s30, 8 }
  0xc0   : > { %1115 = vmatpush3.bf16.msra.mxu0 %v1114_v5  ;;  %v466_v10 = vld [vmem:[#allocation7 + $0x8] sm:$0xff]  ;;  %v467_v14 = vld [vmem:[#allocation7 + $0x10] sm:$0xff]  ;;  %v472_v16 = vld [vmem:[#allocation7 + $0x38] sm:$0xff]  ;;  %v1120_v23 = vpack.c.bf16 %v382_v8, %v381_v7  ;;  %s800_s20 = sshll.u32 %s375_s1, 4  ;;  %s1949_s12 = scalar_lea.hbm %s2026_s7, %s980_s17  ;;  %s801_s20 = int_to_ptr.vmem [resolvable:$true] %s800_s20 }
  0xc1   : > { %1116 = vmatprep.subr.bf16.mxu0 %v1610_v0  ;;  %v1125_v13 = vpack.c.bf16 %v468_v11, %v466_v10  ;;  %v470_v15 = vld [vmem:[#allocation7 + $0x28] sm:$0xff]  ;;  %v1127_v17 = vpack.c.bf16 %v467_v14, %v465_v12  ;;  %v469_v19 = vld [vmem:[#allocation7 + $0x20] sm:$0xff]  ;;  %v471_v20 = vld [vmem:[#allocation7 + $0x30] sm:$0xff]  ;;  %s773_s28 = scalar_lea.sflag [#allocation15], %s1892_s19  ;;  %s1488_s15 = scalar_lea.vmem %s801_s20, 256 }
  0xc2   : > { %v1129_v18 = vpack.c.bf16 %v472_v16, %v470_v15  ;;  %v474_v21 = vld [vmem:[#allocation7 + $0x48] sm:$0xff]  ;;  %v476_v22 = vld [vmem:[#allocation7 + $0x58] sm:$0xff]  ;;  %v383_v24 = vld [vmem:[#allocation5 + $0x30] sm:$0xff]  ;;  %v1131_v25 = vpack.c.bf16 %v471_v20, %v469_v19  ;;  %p1489_p7 = scmp.ne.s32.totalorder %s801_s20, %s1488_s15  ;;  %p2051_p4 = scmp.ne.s32.totalorder %s2041_s16, 0 }
  0xc3   : > { %1126 = vmatprep.subr.bf16.mxu1 %v1125_v13  ;;  %v384_v26 = vld [vmem:[#allocation5 + $0x38] sm:$0xff]  ;;  %v1133_v27 = vpack.c.bf16 %v476_v22, %v474_v21  ;;  %v473_v28 = vld [vmem:[#allocation7 + $0x40] sm:$0xff]  ;;  %v475_v29 = vld [vmem:[#allocation7 + $0x50] sm:$0xff]  ;;  %s1613_s18 = smov [#allocation14]  }
  0xc4   : > { %1118 = vmatpush3.bf16.msra.mxu0 %v1117_v9  ;;  %1128 = vmatpush1.bf16.msra.mxu1 %v1127_v17  ;;  %v478_v30 = vld [vmem:[#allocation7 + $0x68] sm:$0xff]  ;;  %v480_v31 = vld [vmem:[#allocation7 + $0x78] sm:$0xff]  ;;  %v1123_v32 = vpack.c.bf16 %v384_v26, %v383_v24  ;;  %v1135_v33 = vpack.c.bf16 %v475_v29, %v473_v28  ;;  %v477_v35 = vld [vmem:[#allocation7 + $0x60] sm:$0xff]  ;;  %p1490_p12 = pnand %p1489_p7, %p2051_p4  ;;  %s1492_s13 = sshll.u32 %s1613_s18, 4  ;;  %s1493_s13 = int_to_ptr.vmem [resolvable:$false] %s1492_s13 }
  0xc5   : > { %1119 = vmatprep.subr.bf16.mxu0 %v1610_v0  ;;  %1130 = vmatprep.subr.bf16.mxu1 %v1129_v18  ;;  %v1137_v34 = vpack.c.bf16 %v480_v31, %v478_v30  ;;  %v479_v36 = vld [vmem:[#allocation7 + $0x70] sm:$0xff]  ;;  %v482_v37 = vld [vmem:[#allocation7 + $0x88] sm:$0xff]  ;;  %v484_v38 = vld [vmem:[#allocation7 + $0x98] sm:$0xff]  ;;  %s1494_s22 = scalar_lea.vmem %s1493_s13, 512  ;;  %p1495_p13 = scmp.lt.s32.totalorder %s801_s20, %s1493_s13 }
  0xc6   : > { %v376_v39 = vld [vmem:[%s1898_s9] sm:$0xff]  ;;  %v1139_v40 = vpack.c.bf16 %v479_v36, %v477_v35  ;;  %v1141_v41 = vpack.c.bf16 %v484_v38, %v482_v37  ;;  %v481_v42 = vld [vmem:[#allocation7 + $0x80] sm:$0xff]  ;;  %v486_v45 = vld [vmem:[#allocation7 + $0xa8] sm:$0xff]  ;;  %p1491_p1 = pneg %p1490_p12  ;;  %p1496_p0 = scmp.lt.s32.totalorder %s1494_s22, %s1488_s15 }
  0xc7   : > { %v483_v43 = vld [vmem:[#allocation7 + $0x90] sm:$0xff]  ;;  %v488_v46 = vld [vmem:[#allocation7 + $0xb8] sm:$0xff]  ;;  %v485_v48 = vld [vmem:[#allocation7 + $0xa0] sm:$0xff] }
  0xc8   : > { %1121 = vmatpush3.bf16.msra.mxu0 %v1120_v23  ;;  %1132 = vmatpush1.bf16.msra.mxu1 %v1131_v25  ;;  %v1143_v44 = vpack.c.bf16 %v483_v43, %v481_v42  ;;  %v1145_v47 = vpack.c.bf16 %v488_v46, %v486_v45  ;;  %v487_v49 = vld [vmem:[#allocation7 + $0xb0] sm:$0xff]  ;;  %v490_v51 = vld [vmem:[#allocation7 + $0xc8] sm:$0xff]  ;;  %v492_v52 = vld [vmem:[#allocation7 + $0xd8] sm:$0xff]  ;;  %p1497_p2 = por %p1496_p0, %p1495_p13 }
  0xc9   : > { %1122 = vmatprep.subr.bf16.mxu0 %v1610_v0  ;;  %1134 = vmatprep.subr.bf16.mxu1 %v1133_v27  ;;  %v1147_v50 = vpack.c.bf16 %v487_v49, %v485_v48  ;;  %v489_v53 = vld [vmem:[#allocation7 + $0xc0] sm:$0xff]  ;;  %v1149_v54 = vpack.c.bf16 %v492_v52, %v490_v51  ;;  %v491_v55 = vld [vmem:[#allocation7 + $0xd0] sm:$0xff]  ;;  %v494_v56 = vld [vmem:[#allocation7 + $0xe8] sm:$0xff] }
  0xca   : > { %v496_v57 = vld [vmem:[#allocation7 + $0xf8] sm:$0xff]  ;;  %v1151_v58 = vpack.c.bf16 %v491_v55, %v489_v53  ;;  %v493_v60 = vld [vmem:[#allocation7 + $0xe0] sm:$0xff]  ;;  %v495_v61 = vld [vmem:[#allocation7 + $0xf0] sm:$0xff]  ;;  %p1498_p3 = pnand %p1497_p2, %p1491_p1 }
  0xcb   : > { %v1153_v59 = vpack.c.bf16 %v496_v57, %v494_v56  ;;  %v1155_v62 = vpack.c.bf16 %v495_v61, %v493_v60  ;;  %v581_v63 = vld [vmem:[#allocation8] sm:$0xff]  ;;  %v582_v2 = vld [vmem:[#allocation8 + $0x8] sm:$0xff]  ;;  %v583_v3 = vld [vmem:[#allocation8 + $0x10] sm:$0xff] }
  0xcc   : > { %1124 = vmatpush3.bf16.msra.mxu0 %v1123_v32  ;;  %1136 = vmatpush1.bf16.msra.mxu1 %v1135_v33  ;;  %v1158_v4 = vpack.c.bf16 %v582_v2, %v581_v63  ;;  %v584_v5 = vld [vmem:[#allocation8 + $0x18] sm:$0xff]  ;;  %v585_v7 = vld [vmem:[#allocation8 + $0x20] sm:$0xff]  ;;  %v586_v8 = vld [vmem:[#allocation8 + $0x28] sm:$0xff] }
  0xcd   : > { %1138 = vmatprep.subr.bf16.mxu1 %v1137_v34  ;;  %1157 = vmatprep.subr.bf16.mxu0 %v1610_v0  ;;  %v1161_v6 = vpack.c.bf16 %v584_v5, %v583_v3  ;;  %v1164_v9 = vpack.c.bf16 %v586_v8, %v585_v7  ;;  %v587_v10 = vld [vmem:[#allocation8 + $0x30] sm:$0xff]  ;;  %v588_v11 = vld [vmem:[#allocation8 + $0x38] sm:$0xff]  ;;  %v589_v13 = vld [vmem:[#allocation8 + $0x40] sm:$0xff] }
  0xce   : > { %v1167_v12 = vpack.c.bf16 %v588_v11, %v587_v10  ;;  %v590_v14 = vld [vmem:[#allocation8 + $0x48] sm:$0xff]  ;;  %v591_v16 = vld [vmem:[#allocation8 + $0x50] sm:$0xff]  ;;  %v592_v17 = vld [vmem:[#allocation8 + $0x58] sm:$0xff] }
  0xcf   : > { %1041 = vmatmul.mubr.msk.f32.vlgmr.msra.gmra.mrb[0].mxu0 %vm390_vm1, %v376_v39  ;;  %v1170_v15 = vpack.c.bf16 %v590_v14, %v589_v13  ;;  %v1173_v18 = vpack.c.bf16 %v592_v17, %v591_v16  ;;  %v593_v19 = vld [vmem:[#allocation8 + $0x60] sm:$0xff]  ;;  %v594_v20 = vld [vmem:[#allocation8 + $0x68] sm:$0xff]  ;;  %v595_v27 = vld [vmem:[#allocation8 + $0x70] sm:$0xff] }
  0xd0   : > { %1140 = vmatpush1.bf16.msra.mxu1 %v1139_v40  ;;  %1075 = vmatprep.mubr.msk.f32.mxu0 %vm1611_vm0, %v1612_v1  ;;  %v1176_v21 = vpack.c.bf16 %v594_v20, %v593_v19  ;;  %v969_v22 = vld [vmem:[#allocation11] ss:$0 sm:$0xff]  ;;  %v596_v28 = vld [vmem:[#allocation8 + $0x78] sm:$0xff]  ;;  %v674_v31 = vld [vmem:[#allocation10 + $0x8] sm:$0xff] }
  0xd1   : > { %1142 = vmatprep.subr.bf16.mxu1 %v1141_v41  ;;  %1159 = vmatpush3.bf16.msra.mxu0 %v1158_v4  ;;  %v1179_v29 = vpack.c.bf16 %v596_v28, %v595_v27  ;;  %v673_v30 = vld [vmem:[#allocation10] sm:$0xff]  ;;  %v675_v32 = vld [vmem:[#allocation10 + $0x10] sm:$0xff]  ;;  %v676_v34 = vld [vmem:[#allocation10 + $0x18] sm:$0xff] }
  0xd2   : > { %1160 = vmatprep.subr.bf16.mxu0 %v1610_v0  ;;  %v1182_v33 = vpack.c.bf16 %v674_v31, %v673_v30  ;;  %v1185_v35 = vpack.c.bf16 %v676_v34, %v675_v32  ;;  %v677_v36 = vld [vmem:[#allocation10 + $0x20] sm:$0xff]  ;;  %v678_v37 = vld [vmem:[#allocation10 + $0x28] sm:$0xff]  ;;  %v680_v39 = vld [vmem:[#allocation10 + $0x38] sm:$0xff] }
  0xd3   : > { %v1188_v38 = vpack.c.bf16 %v678_v37, %v677_v36  ;;  %v681_v41 = vld [vmem:[#allocation10 + $0x40] sm:$0xff]  ;;  %v682_v42 = vld [vmem:[#allocation10 + $0x48] sm:$0xff]  ;;  %v683_v55 = vld [vmem:[#allocation10 + $0x50] sm:$0xff] }
  0xd4   : > { %1144 = vmatpush1.bf16.msra.mxu1 %v1143_v44  ;;  %v1194_v43 = vpack.c.bf16 %v682_v42, %v681_v41  ;;  %v500_v44 = vlaneseq  ;;  %v684_v56 = vld [vmem:[#allocation10 + $0x58] sm:$0xff]  ;;  %v687_v61 = vld [vmem:[#allocation10 + $0x70] sm:$0xff]  ;;  %v971_v2 = vld [vmem:[#allocation11 + $0x2] ss:$0 sm:$0xff] }
  0xd5   : > { %1146 = vmatprep.subr.bf16.mxu1 %v1145_v47  ;;  %1162 = vmatpush3.bf16.msra.mxu0 %v1161_v6  ;;  %v498_v47 = vld [vmem:[#allocation11 + $0x1] ss:$4 sm:$0x3]  ;;  %v1197_v57 = vpack.c.bf16 %v684_v56, %v683_v55 }
  0xd6   : > { %1163 = vmatprep.subr.bf16.mxu0 %v1610_v0  ;;  %v501_v45 = vshrl.u32 %v500_v44, 7 }
  0xd8   : > { %1148 = vmatpush1.bf16.msra.mxu1 %v1147_v50  ;;  %v502_v46 = vsub.s32 0, %v501_v45  ;;  %v506_v48 = vsub.s32 1, %v501_v45 }
  0xd9   : > { %1150 = vmatprep.subr.bf16.mxu1 %v1149_v54  ;;  %1165 = vmatpush3.bf16.msra.mxu0 %v1164_v9 }
  0xda   : > { %1166 = vmatprep.subr.bf16.mxu0 %v1610_v0  ;;  %v503_v49 = vrot.slane %v498_v47, %v502_v46  ;;  %v507_v50 = vrot.slane %v498_v47, %v506_v48 }
  0xdc   : > { %1152 = vmatpush1.bf16.msra.mxu1 %v1151_v58  ;;  %v685_v58 = vld [vmem:[#allocation10 + $0x60] sm:$0xff] }
  0xdd   : > { %1154 = vmatprep.subr.bf16.mxu1 %v1153_v59  ;;  %1168 = vmatpush3.bf16.msra.mxu0 %v1167_v12  ;;  %v686_v59 = vld [vmem:[#allocation10 + $0x68] sm:$0xff] }
  0xde   : > { %1169 = vmatprep.subr.bf16.mxu0 %v1610_v0  ;;  %v1200_v60 = vpack.c.bf16 %v686_v59, %v685_v58 }
  0xe0   : > { %1156 = vmatpush1.bf16.msra.mxu1 %v1155_v62  ;;  %v688_v62 = vld [vmem:[#allocation10 + $0x78] sm:$0xff] }
  0xe1   : > { %1181 = vmatprep.subr.bf16.mxu1 %v1610_v0  ;;  %1171 = vmatpush3.bf16.msra.mxu0 %v1170_v15  ;;  %v1203_v63 = vpack.c.bf16 %v688_v62, %v687_v61 }
  0xe2   : > { %1172 = vmatprep.subr.bf16.mxu0 %v1610_v0 }
  0xe5   : > { %1174 = vmatpush3.bf16.msra.mxu0 %v1173_v18 }
  0xe6   : > { %1175 = vmatprep.subr.bf16.mxu0 %v1610_v0 }
  0xe9   : > { %1177 = vmatpush3.bf16.msra.mxu0 %v1176_v21 }
  0xea   : > { %1178 = vmatprep.subr.bf16.mxu0 %v1610_v0 }
  0xed   : > { %1180 = vmatpush3.bf16.msra.mxu0 %v1179_v29 }
 0x1a2   : > { %v460_v23 = vpop.f32.mrb[0].mxu0 }
 0x1a3   : > { %v461_v24 = vadd.f32 %v969_v22, %v460_v23  ;;  %v1042_v25 = vpop.f32.mrb[1].mxu0 }
 0x1a5   : > { %1314 = vtanh.f32 %v461_v24 }
 0x1af   : > { %v1315_v26 = vpop.eup %1314 }
 0x1b0   : > { %575 = vmatmul.mubr.f32.vlgmr.msra.gmra.mrb[0].mxu1 %v1315_v26 }
 0x1b1   : > { %1110 = vmatprep.mubr.msk.f32.mxu1 %vm1611_vm0, %v1612_v1  ;;  %1183 = vmatpush3.bf16.msra.mxu1 %v1182_v33  ;;  %v679_v1 = vld [vmem:[#allocation10 + $0x30] sm:$0xff] }
 0x1b2   : > { %1184 = vmatprep.subr.bf16.mxu1 %v1610_v0  ;;  %v1191_v40 = vpack.c.bf16 %v680_v39, %v679_v1 }
 0x1b5   : > { %1186 = vmatpush3.bf16.msra.mxu1 %v1185_v35 }
 0x1b6   : > { %1187 = vmatprep.subr.bf16.mxu1 %v1610_v0 }
 0x1b9   : > { %1189 = vmatpush3.bf16.msra.mxu1 %v1188_v38 }
 0x1ba   : > { %1190 = vmatprep.subr.bf16.mxu1 %v1610_v0 }
 0x1bd   : > { %1192 = vmatpush3.bf16.msra.mxu1 %v1191_v40 }
 0x1be   : > { %1193 = vmatprep.subr.bf16.mxu1 %v1610_v0 }
 0x1c1   : > { %1195 = vmatpush3.bf16.msra.mxu1 %v1194_v43 }
 0x1c2   : > { %1196 = vmatprep.subr.bf16.mxu1 %v1610_v0 }
 0x1c5   : > { %1198 = vmatpush3.bf16.msra.mxu1 %v1197_v57 }
 0x1c6   : > { %1199 = vmatprep.subr.bf16.mxu1 %v1610_v0 }
 0x1c9   : > { %1201 = vmatpush3.bf16.msra.mxu1 %v1200_v60 }
 0x1ca   : > { %1202 = vmatprep.subr.bf16.mxu1 %v1610_v0 }
 0x1cd   : > { %1204 = vmatpush3.bf16.msra.mxu1 %v1203_v63 }
 0x283   : > { %v576_v51 = vpop.f32.mrb[0].mxu1 }
 0x284   : > { %v577_v52 = vadd.f32 %v576_v51, %v503_v49  ;;  %v578_v53 = vpop.f32.mrb[1].mxu1 }
 0x285   : > { %v579_v54 = vadd.f32 %v578_v53, %v507_v50 }
 0x286   : > { %765 = vst [vmem:[%s375_s1] sm:$0xff] %v577_v52  ;;  %1076 = vmatmul.mubr.f32.vlgmr.msra.gmra.mrb[2].mxu0 %v577_v52 }
 0x287   : > { %766 = vst [vmem:[%s375_s1 + $0x8] sm:$0xff] %v579_v54 }
 0x359   : > { %v668_v3 = vpop.f32.mrb[2].mxu0 }
 0x35a   : > { %v669_v4 = vadd.f32 %v971_v2, %v668_v3  ;;  %v1077_v5 = vpop.f32.mrb[3].mxu0 }
 0x35c   : > { %1316 = vtanh.f32 %v669_v4 }
 0x366   : > { %v1317_v6 = vpop.eup %1316 }
 0x367   : > { %1111 = vmatmul.mubr.f32.vlgmr.msra.gmra.mrb[2].mxu1 %v1317_v6 }
 0x368   : > { %1501 = shalt.err (!%p1498_p3)
}
 0x369   : > { %s1502_s9 = scalar_lea.hbm %s1949_s12, 256  ;;  %s1506_s17 = scalar_lea.hbm %s2026_s7, 512 }
 0x36a   : > { %p1503_p6 = scmp.ne.s32.totalorder %s1949_s12, %s1502_s9  ;;  %p1507_p8 = scmp.lt.u32.totalorder %s1949_s12, %s2026_s7 }
 0x36b   : > { %p1508_p5 = scmp.lt.u32.totalorder %s1506_s17, %s1502_s9  ;;  %p1510_p7 = scmp.lt.u32.totalorder %s1502_s9, %s1949_s12 }
 0x36c   : > { %p1504_p10 = pnand %p1503_p6, %p2051_p4 }
 0x36d   : > { %p1509_p9 = por %p1508_p5, %p1507_p8 }
 0x36e   : > { %p1505_p11 = pneg %p1504_p10 }
 0x36f   : > { %p1511_p12 = por %p1510_p7, %p1509_p9 }
 0x371   : > { %p1512_p1 = pnand %p1511_p12, %p1505_p11 }
 0x373   : > { %1515 = shalt.err (!%p1512_p1)
}
 0x374   : > { %1228 = dma.vmem_to_hbm [thread:$0]  (%p2051_p4), %s801_s20, 256, %s1949_s12, %s773_s28   ;;  %v972_v0 = vld [vmem:[#allocation11 + $0x3] ss:$0 sm:$0xff] }
 0x375   : > { %s975_s15 = sshll.u32 %s1676_s30, 7  ;;  %s368_s18 = scalar_lea.vmem [#allocation13], %s961_s23 }
 0x376   : > { %s786_s13 = sshll.u32 %s368_s18, 4  ;;  %s1975_s8 = scalar_lea.hbm %s2025_s6, %s975_s15  ;;  %s1977_s13 = int_to_ptr.vmem [resolvable:$true] %s786_s13 }
 0x377   : > { %s768_s20 = scalar_lea.sflag [#allocation4], %s1892_s19  ;;  %s1516_s12 = scalar_lea.vmem %s1977_s13, 128 }
 0x378   : > { %p1517_p13 = scmp.ne.s32.totalorder %s1977_s13, %s1516_s12  ;;  %s1614_s30 = smov [#allocation13]  }
 0x379   : > { %s1520_s23 = sshll.u32 %s1614_s30, 4  ;;  %s1521_s23 = int_to_ptr.vmem [resolvable:$false] %s1520_s23 }
 0x37a   : > { %p1518_p0 = pnand %p1517_p13, %p2051_p4  ;;  %s1522_s28 = scalar_lea.vmem %s1521_s23, 256 }
 0x37b   : > { %p1523_p3 = scmp.lt.s32.totalorder %s1977_s13, %s1521_s23  ;;  %p1524_p6 = scmp.lt.s32.totalorder %s1522_s28, %s1516_s12 }
 0x37c   : > { %p1519_p2 = pneg %p1518_p0 }
 0x37d   : > { %p1525_p10 = por %p1524_p6, %p1523_p3 }
 0x37f   : > { %p1526_p11 = pnand %p1525_p10, %p1519_p2 }
 0x43a   : > { %v760_v7 = vpop.f32.mrb[2].mxu1 }
 0x43b   : > { %v761_v8 = vadd.f32 %v972_v0, %v760_v7  ;;  %v1112_v9 = vpop.f32.mrb[3].mxu1 }
 0x43d   : > { %764 = vst [vmem:[%s368_s18] sm:$0xff] %v761_v8 }
 0x43e   : > { %1529 = shalt.err (!%p1526_p11)
}
 0x43f   : > { %s1530_s19 = scalar_lea.hbm %s1975_s8, 128  ;;  %s1534_s14 = scalar_lea.hbm %s2025_s6, 256 }
 0x440   : > { %p1531_p8 = scmp.ne.s32.totalorder %s1975_s8, %s1530_s19  ;;  %p1535_p7 = scmp.lt.u32.totalorder %s1975_s8, %s2025_s6 }
 0x441   : > { %p1536_p12 = scmp.lt.u32.totalorder %s1534_s14, %s1530_s19  ;;  %p1538_p13 = scmp.lt.u32.totalorder %s1530_s19, %s1975_s8 }
 0x442   : > { %p1532_p5 = pnand %p1531_p8, %p2051_p4 }
 0x443   : > { %p1537_p1 = por %p1536_p12, %p1535_p7 }
 0x444   : > { %p1533_p9 = pneg %p1532_p5 }
 0x445   : > { %p1539_p0 = por %p1538_p13, %p1537_p1 }
 0x447   : > { %p1540_p2 = pnand %p1539_p0, %p1533_p9 }
 0x449   : > { %1543 = shalt.err (!%p1540_p2)
}
 0x44a   : > { %1227 = dma.vmem_to_hbm [thread:$0]  (%p2051_p4), %s1977_s13, 128, %s1975_s8, %s768_s20  }
 0x44b PF: > { %s812_s18 = sand.u32 1, %s1586_s24   ;;  %p2052_p3 = scmp.ne.s32.totalorder %s2042_s29, 0 }
 0x44c   : > { %p2053_p6 = scmp.ge.s32.totalorder %s1598_s27, 2  ;;  %s813_s22 = scalar_lea.sflag [#allocation4], %s812_s18 }
 0x44e   : > { %p1252_p10 = pnand %p2053_p6, %p2052_p3 }
 0x450   : > { %1577 = dma.done.wait (!%p1252_p10), %s813_s22, 128  }
 0x451   : > { %1579 = vsyncadd (!%p1252_p10), %s813_s22, 4294967168  ;;  %s822_s9 = scalar_lea.sflag [#allocation15], %s812_s18 }
 0x452   : > { %1581 = dma.done.wait (!%p1252_p10), %s822_s9, 256  }
 0x453   : > { %1583 = vsyncadd (!%p1252_p10), %s822_s9, 4294967040  ;;  %p27_p4 = scmp.ge.s32.totalorder %s1822_s11, 4   ;;  %s2054_s24 = smov %s1590_s25 }
 0x454   : > { %s2055_s25 = smov %s1594_s26  ;;  %s2056_s26 = smov %s1834_s21 }
 0x455   : > { %s2057_s27 = smov %s1822_s11  ;;  %29 = sbr.rel (!%p27_p4) target bundleno = 12 (0xc), region = 127 }
 0x45c   :  { %827 = vsyncpa [#allocation3], 1 }
 0x45d   :  { %829 = vsyncpa [#allocation3 + $0x1], 1 }
 0x45e   :  { %830 = vsyncpa [#allocation6], 1 }
 0x45f   :  { %831 = vsyncpa [#allocation9], 1 }
 0x460   :  { %832 = vsyncpa [#allocation12], 1 }
 0x461   :  { %833 = vsyncpa [#allocation4], 1 }
 0x462   :  { %835 = vsyncpa [#allocation4 + $0x1], 1 }
 0x463   :  { %836 = vsyncpa [#allocation15], 1 }
 0x464   :  { %838 = vsyncpa [#allocation15 + $0x1], 1 }

</bundles_post_ra>
